<compile_context>
chip_gen: v5e
topology: v5e:2x2
jax: 0.10.0
libtpu: 0.0.40
codegen_flags: <defaults>
</compile_context>

<pallas_src>
import functools

import jax
import jax.numpy as jnp
from jax.experimental import pallas as pl
from jax.experimental.pallas import tpu as pltpu


def _round_up(x: int, m: int) -> int:
    return ((x + m - 1) // m) * m


# ---------------------------------------------------------------------------
# VMEM footprint estimates (bytes) for tile selection / vmem_limit_bytes.
# ---------------------------------------------------------------------------
def _resident_vmem_bytes(tb: int, d1p: int, d2p: int, isz: int) -> int:
    act = 2 * tb * (d1p + d2p + d1p) * isz                 # x1, x2, out (double-buffered)
    weights = (d2p * d1p + 2 * d1p * d1p + 2 * d1p) * isz  # single-buffered residents
    interm = 3 * tb * d1p * 4                              # x2p, z, gate in f32
    return act + weights + interm


def _ntile_vmem_bytes(tb: int, tn: int, d1p: int, d2p: int, isz: int) -> int:
    act = 2 * tb * (d1p + d2p) * isz + 2 * tb * tn * isz   # x1, x2 + out tile
    weights = (d2p * d1p + d1p) * isz + 2 * (2 * d1p * tn + 2 * tn) * isz
    scratch = tb * d1p * 4                                 # x2p f32 scratch
    interm = 2 * tb * tn * 4                               # z, gate
    return act + weights + scratch + interm


# ---------------------------------------------------------------------------
# Kernels
# ---------------------------------------------------------------------------
def gate1_kernel(x1_ref, x2_ref, wp_ref, bp_ref, wz1_ref, wz2_ref, bz_ref,
                 out_ref):
    """Fully weight-resident path: one batch tile per grid step."""
    x1 = x1_ref[...]                                    # (TB, D1p), native dtype
    x2 = x2_ref[...]                                    # (TB, D2p), native dtype

    # proj: x2p = x2 @ Wp^T + bp   (wp_ref laid out as (D2p, D1p))
    x2p = jnp.dot(x2, wp_ref[...], preferred_element_type=jnp.float32)
    x2p = x2p + bp_ref[...]                             # (1, D1p) broadcasts

    # Wz(cat([x1, x2p])) == x1 @ Wz1 + x2p @ Wz2  (concat eliminated)
    z = jnp.dot(x1, wz1_ref[...], preferred_element_type=jnp.float32)
    z = z + jnp.dot(x2p.astype(wz2_ref.dtype), wz2_ref[...],
                    preferred_element_type=jnp.float32)
    z = z + bz_ref[...]

    # sigmoid(z) with a single EUP transcendental per element.
    gate = 0.5 * (jnp.tanh(0.5 * z) + 1.0)

    x1f = x1.astype(jnp.float32)
    out_ref[...] = (x1f + gate * (x2p - x1f)).astype(out_ref.dtype)


def gate1_ntile_kernel(x1_ref, x2_ref, wp_ref, bp_ref, wz1_ref, wz2_ref,
                       bz_ref, out_ref, x2p_ref):
    """Large-D fallback: grid = (batch tiles, output-feature tiles).
    x2p is computed once per batch tile (j == 0) into VMEM scratch."""
    j = pl.program_id(1)
    tn = out_ref.shape[1]

    @pl.when(j == 0)
    def _():
        x2p = jnp.dot(x2_ref[...], wp_ref[...],
                      preferred_element_type=jnp.float32)
        x2p_ref[...] = x2p + bp_ref[...]

    x1 = x1_ref[...]                                    # (TB, D1p)
    x2p_full = x2p_ref[...]                             # (TB, D1p) f32

    z = jnp.dot(x1, wz1_ref[...], preferred_element_type=jnp.float32)
    z = z + jnp.dot(x2p_full.astype(wz2_ref.dtype), wz2_ref[...],
                    preferred_element_type=jnp.float32)
    z = z + bz_ref[...]                                 # (1, TN) broadcasts
    gate = 0.5 * (jnp.tanh(0.5 * z) + 1.0)

    col = pl.multiple_of(j * tn, 128)
    x1j = x1_ref[:, pl.ds(col, tn)].astype(jnp.float32)
    x2pj = x2p_ref[:, pl.ds(col, tn)]
    out_ref[...] = (x1j + gate * (x2pj - x1j)).astype(out_ref.dtype)


# ---------------------------------------------------------------------------
# One-time parameter layout (hoisted out of the per-call path)
# ---------------------------------------------------------------------------
def gate1_prepare_params(wp, bp, wz, bz):
    """wp: (D1, D2), bp: (D1,), wz: (D1, 2*D1), bz: (D1,). Transpose, split the
    concat weight into its x1 / x2p halves, zero-pad to 128-lane multiples."""
    D1, D2 = wp.shape
    D1p = _round_up(D1, 128)
    D2p = _round_up(D2, 128)

    wp_t = jnp.zeros((D2p, D1p), wp.dtype).at[:D2, :D1].set(wp.T)
    wz1 = jnp.zeros((D1p, D1p), wz.dtype).at[:D1, :D1].set(wz[:, :D1].T)
    wz2 = jnp.zeros((D1p, D1p), wz.dtype).at[:D1, :D1].set(wz[:, D1:].T)
    bp_p = jnp.zeros((1, D1p), bp.dtype).at[0, :D1].set(bp)
    bz_p = jnp.zeros((1, D1p), bz.dtype).at[0, :D1].set(bz)
    return (wp_t, bp_p, wz1, wz2, bz_p), (D1, D2, D1p, D2p)


# ---------------------------------------------------------------------------
# Forward wrapper
# ---------------------------------------------------------------------------
@functools.partial(jax.jit, static_argnames=("dims", "tb", "force_ntile"))
def gate1_forward(x1, x2, params, *, dims, tb=512, force_ntile=False):
    """x1: (B, D1), x2: (B, D2); params/dims from gate1_prepare_params."""
    wp_t, bp_p, wz1, wz2, bz_p = params
    D1, D2, D1p, D2p = dims
    B = x1.shape[0]
    itemsize = jnp.dtype(x1.dtype).itemsize
    sub = 16 if itemsize < 4 else 8          # sublane packing for bf16/int8

    budget = 38 << 20                        # fits v7x (64 MiB phys) w/ headroom

    # Megacore: keep >= 2 batch grid steps when the batch allows it (v7x 2 TC).
    tb_cap = max(sub, _round_up(-(-B // 2), sub))
    TB = max(sub, (min(tb, tb_cap) // sub) * sub)

    use_ntile = force_ntile or (
        _resident_vmem_bytes(sub, D1p, D2p, itemsize) > budget)

    if not use_ntile:
        while TB > sub and _resident_vmem_bytes(TB, D1p, D2p, itemsize) > budget:
            TB = max(sub, (TB // 2) // sub * sub)
        est = _resident_vmem_bytes(TB, D1p, D2p, itemsize)
        TN = D1p
    else:
        TN = 128
        for cand in (512, 256, 128):
            if D1p % cand == 0:
                TN = cand
                break
        while TB > sub and _ntile_vmem_bytes(TB, TN, D1p, D2p, itemsize) > budget:
            TB = max(sub, (TB // 2) // sub * sub)
        est = _ntile_vmem_bytes(TB, TN, D1p, D2p, itemsize)
        # TODO(synk): for extreme D2p where Wp^T alone exceeds the budget, the
        # projection would also need K/N tiling; not needed at these sizes.

    Bp = _round_up(B, TB)

    # Skip the pad copy / final slice entirely when shapes are already aligned
    # (each is a full extra HBM round-trip of the activations / output).
    if Bp == B and D1p == D1:
        x1p = x1
    else:
        x1p = jnp.zeros((Bp, D1p), x1.dtype).at[:B, :D1].set(x1)
    if Bp == B and D2p == D2:
        x2pad = x2
    else:
        x2pad = jnp.zeros((Bp, D2p), x2.dtype).at[:B, :D2].set(x2)

    cost = pl.CostEstimate(
        flops=2 * Bp * D1p * (D2p + 2 * D1p) + 5 * Bp * D1p,
        transcendentals=Bp * D1p,
        bytes_accessed=(Bp * (2 * D1p + D2p)
                        + D2p * D1p + 2 * D1p * D1p + 2 * D1p) * itemsize,
    )

    vmem_limit = int(min(max(int(est * 1.5) + (2 << 20), 32 << 20), 60 << 20))
    # NOTE: feeding bf16 activations (with f32 accumulation kept via
    # preferred_element_type) halves activation HBM traffic and uses the
    # native bf16 MXU path on v6e/v7x, if model precision allows.

    if not use_ntile:
        out = pl.pallas_call(
            gate1_kernel,
            out_shape=jax.ShapeDtypeStruct((Bp, D1p), x1.dtype),
            grid=(Bp // TB,),
            in_specs=[
                pl.BlockSpec((TB, D1p), lambda i: (i, 0)),   # x1 (batch-tiled)
                pl.BlockSpec((TB, D2p), lambda i: (i, 0)),   # x2 (batch-tiled)
                pl.BlockSpec((D2p, D1p), lambda i: (0, 0),   # Wp^T resident
                             pipeline_mode=pl.Buffered(1)),
                pl.BlockSpec((1, D1p), lambda i: (0, 0),     # bp resident
                             pipeline_mode=pl.Buffered(1)),
                pl.BlockSpec((D1p, D1p), lambda i: (0, 0),   # Wz1 resident
                             pipeline_mode=pl.Buffered(1)),
                pl.BlockSpec((D1p, D1p), lambda i: (0, 0),   # Wz2 resident
                             pipeline_mode=pl.Buffered(1)),
                pl.BlockSpec((1, D1p), lambda i: (0, 0),     # bz resident
                             pipeline_mode=pl.Buffered(1)),
            ],
            out_specs=pl.BlockSpec((TB, D1p), lambda i: (i, 0)),
            compiler_params=pltpu.CompilerParams(
                dimension_semantics=("parallel",),
                vmem_limit_bytes=vmem_limit),
            cost_estimate=cost,
        )(x1p, x2pad, wp_t, bp_p, wz1, wz2, bz_p)
    else:
        out = pl.pallas_call(
            gate1_ntile_kernel,
            out_shape=jax.ShapeDtypeStruct((Bp, D1p), x1.dtype),
            grid=(Bp // TB, D1p // TN),
            in_specs=[
                pl.BlockSpec((TB, D1p), lambda i, j: (i, 0)),   # x1
                pl.BlockSpec((TB, D2p), lambda i, j: (i, 0)),   # x2
                pl.BlockSpec((D2p, D1p), lambda i, j: (0, 0),   # Wp^T resident
                             pipeline_mode=pl.Buffered(1)),
                pl.BlockSpec((1, D1p), lambda i, j: (0, 0),     # bp resident
                             pipeline_mode=pl.Buffered(1)),
                pl.BlockSpec((D1p, TN), lambda i, j: (0, j)),   # Wz1 N-tile
                pl.BlockSpec((D1p, TN), lambda i, j: (0, j)),   # Wz2 N-tile
                pl.BlockSpec((1, TN), lambda i, j: (0, j)),     # bz N-tile
            ],
            out_specs=pl.BlockSpec((TB, TN), lambda i, j: (i, j)),
            scratch_shapes=[pltpu.VMEM((TB, D1p), jnp.float32)],
            compiler_params=pltpu.CompilerParams(
                dimension_semantics=("parallel", "arbitrary"),
                vmem_limit_bytes=vmem_limit),
            cost_estimate=cost,
        )(x1p, x2pad, wp_t, bp_p, wz1, wz2, bz_p)

    if Bp != B or D1p != D1:
        out = out[:B, :D1]
    return out


def gate1_reference(x1, x2, wp, bp, wz, bz):
    x2p = x2 @ wp.T + bp
    z = jnp.concatenate([x1, x2p], axis=1) @ wz.T + bz
    g = jax.nn.sigmoid(z)
    return (1.0 - g) * x1 + g * x2p


if __name__ == "__main__":
    key = jax.random.PRNGKey(0)
    B, X1_DIM, X2_DIM = 8, 32, 16

    k1, k2, k3, k4, k5, k6 = jax.random.split(key, 6)
    x1 = jax.random.normal(k1, (B, X1_DIM), dtype=jnp.float32)
    x2 = jax.random.normal(k2, (B, X2_DIM), dtype=jnp.float32)

    # PyTorch nn.Linear parameter shapes: (out_features, in_features).
    wp = jax.random.normal(k3, (X1_DIM, X2_DIM), dtype=jnp.float32) * 0.1
    bp = jax.random.normal(k4, (X1_DIM,), dtype=jnp.float32) * 0.1
    wz = jax.random.normal(k5, (X1_DIM, 2 * X1_DIM), dtype=jnp.float32) * 0.1
    bz = jax.random.normal(k6, (X1_DIM,), dtype=jnp.float32) * 0.1

    # One-time parameter layout (hoisted out of the per-call path).
    params, dims = gate1_prepare_params(wp, bp, wz, bz)
    params = jax.tree_util.tree_map(jax.block_until_ready, params)

    ref = gate1_reference(x1, x2, wp, bp, wz, bz)

    # Default (weight-resident) path.
    out = gate1_forward(x1, x2, params, dims=dims)
    jax.block_until_ready(out)
    assert out.shape == (B, X1_DIM)
    assert jnp.allclose(out, ref, atol=2e-5, rtol=2e-5), "resident path mismatch"

    # Large-D fallback path (forced here to exercise it at small shapes).
    out_nt = gate1_forward(x1, x2, params, dims=dims, force_ntile=True)
    jax.block_until_ready(out_nt)
    assert out_nt.shape == (B, X1_DIM)
    assert jnp.allclose(out_nt, ref, atol=2e-5, rtol=2e-5), "N-tiled path mismatch"

    print("KERNEL_OK")
</pallas_src>

<mosaic_0001>
module attributes {stable_mosaic.version = 11 : i64} {
  func.func @gate1_kernel(%arg0: i32, %arg1: memref<8x128xf32, #tpu.memory_space<vmem>>, %arg2: memref<8x128xf32, #tpu.memory_space<vmem>>, %arg3: memref<128x128xf32, #tpu.memory_space<vmem>>, %arg4: memref<1x128xf32, #tpu.memory_space<vmem>>, %arg5: memref<128x128xf32, #tpu.memory_space<vmem>>, %arg6: memref<128x128xf32, #tpu.memory_space<vmem>>, %arg7: memref<1x128xf32, #tpu.memory_space<vmem>>, %arg8: memref<8x128xf32, #tpu.memory_space<vmem>>) attributes {dimension_semantics = [#tpu.dimension_semantics<parallel>], iteration_bounds = array<i64: 1>, scalar_prefetch = 0 : i64, scratch_operands = 0 : i64, tpu.core_type = #tpu.core_type<tc>, window_params = [{transform_indices = @transform_0, window_bounds = array<i64: 8, 128>}, {transform_indices = @transform_1, window_bounds = array<i64: 8, 128>}, {pipeline_mode = #tpu.pipeline_mode<synchronous>, transform_indices = @transform_2, window_bounds = array<i64: 128, 128>}, {pipeline_mode = #tpu.pipeline_mode<synchronous>, transform_indices = @transform_3, window_bounds = array<i64: 1, 128>}, {pipeline_mode = #tpu.pipeline_mode<synchronous>, transform_indices = @transform_4, window_bounds = array<i64: 128, 128>}, {pipeline_mode = #tpu.pipeline_mode<synchronous>, transform_indices = @transform_5, window_bounds = array<i64: 128, 128>}, {pipeline_mode = #tpu.pipeline_mode<synchronous>, transform_indices = @transform_6, window_bounds = array<i64: 1, 128>}, {transform_indices = @transform_7, window_bounds = array<i64: 8, 128>}]} {
    %c0 = arith.constant 0 : index
    %c0_0 = arith.constant 0 : index
    %0 = vector.load %arg1[%c0, %c0_0] : memref<8x128xf32, #tpu.memory_space<vmem>>, vector<8x128xf32>
    %c0_1 = arith.constant 0 : index
    %c0_2 = arith.constant 0 : index
    %1 = vector.load %arg2[%c0_1, %c0_2] : memref<8x128xf32, #tpu.memory_space<vmem>>, vector<8x128xf32>
    %c0_3 = arith.constant 0 : index
    %c0_4 = arith.constant 0 : index
    %2 = vector.load %arg3[%c0_3, %c0_4] : memref<128x128xf32, #tpu.memory_space<vmem>>, vector<128x128xf32>
    %cst = arith.constant dense<0.000000e+00> : vector<8x128xf32>
    %3 = tpu.matmul %1, %2, %cst {dimension_numbers = #tpu.dot_dimension_numbers<[1], [0], [0], [1], [0, 0, 1, 1], [], []>} : vector<8x128xf32>, vector<128x128xf32>, vector<8x128xf32> -> vector<8x128xf32>
    %c0_5 = arith.constant 0 : index
    %c0_6 = arith.constant 0 : index
    %4 = vector.load %arg4[%c0_5, %c0_6] : memref<1x128xf32, #tpu.memory_space<vmem>>, vector<1x128xf32>
    %5 = vector.broadcast %4 : vector<1x128xf32> to vector<8x128xf32>
    %6 = arith.addf %3, %5 : vector<8x128xf32>
    %c0_7 = arith.constant 0 : index
    %c0_8 = arith.constant 0 : index
    %7 = vector.load %arg5[%c0_7, %c0_8] : memref<128x128xf32, #tpu.memory_space<vmem>>, vector<128x128xf32>
    %cst_9 = arith.constant dense<0.000000e+00> : vector<8x128xf32>
    %8 = tpu.matmul %0, %7, %cst_9 {dimension_numbers = #tpu.dot_dimension_numbers<[1], [0], [0], [1], [0, 0, 1, 1], [], []>} : vector<8x128xf32>, vector<128x128xf32>, vector<8x128xf32> -> vector<8x128xf32>
    %c0_10 = arith.constant 0 : index
    %c0_11 = arith.constant 0 : index
    %9 = vector.load %arg6[%c0_10, %c0_11] : memref<128x128xf32, #tpu.memory_space<vmem>>, vector<128x128xf32>
    %cst_12 = arith.constant dense<0.000000e+00> : vector<8x128xf32>
    %10 = tpu.matmul %6, %9, %cst_12 {dimension_numbers = #tpu.dot_dimension_numbers<[1], [0], [0], [1], [0, 0, 1, 1], [], []>} : vector<8x128xf32>, vector<128x128xf32>, vector<8x128xf32> -> vector<8x128xf32>
    %11 = arith.addf %8, %10 : vector<8x128xf32>
    %c0_13 = arith.constant 0 : index
    %c0_14 = arith.constant 0 : index
    %12 = vector.load %arg7[%c0_13, %c0_14] : memref<1x128xf32, #tpu.memory_space<vmem>>, vector<1x128xf32>
    %13 = vector.broadcast %12 : vector<1x128xf32> to vector<8x128xf32>
    %14 = arith.addf %11, %13 : vector<8x128xf32>
    %cst_15 = arith.constant 5.000000e-01 : f32
    %15 = vector.broadcast %cst_15 : f32 to vector<8x128xf32>
    %16 = arith.mulf %15, %14 : vector<8x128xf32>
    %17 = math.tanh %16 : vector<8x128xf32>
    %cst_16 = arith.constant 1.000000e+00 : f32
    %18 = vector.broadcast %cst_16 : f32 to vector<8x128xf32>
    %19 = arith.addf %17, %18 : vector<8x128xf32>
    %cst_17 = arith.constant 5.000000e-01 : f32
    %20 = vector.broadcast %cst_17 : f32 to vector<8x128xf32>
    %21 = arith.mulf %20, %19 : vector<8x128xf32>
    %22 = arith.subf %6, %0 : vector<8x128xf32>
    %23 = arith.mulf %21, %22 : vector<8x128xf32>
    %24 = arith.addf %0, %23 : vector<8x128xf32>
    %c0_18 = arith.constant 0 : index
    %c0_19 = arith.constant 0 : index
    %25 = vector.load %arg8[%c0_18, %c0_19] : memref<8x128xf32, #tpu.memory_space<vmem>>, vector<8x128xf32>
    tpu.vector_store %arg8[%c0_18, %c0_19], %24 {strides = array<i32>} : memref<8x128xf32, #tpu.memory_space<vmem>>, vector<8x128xf32>,
    return
  }
  func.func @transform_0(%arg0: i32) -> (i32, i32) {
    %c0_i32 = arith.constant 0 : i32
    %c0_i32_0 = arith.constant 0 : i32
    return %arg0, %c0_i32 : i32, i32
  }
  func.func @transform_1(%arg0: i32) -> (i32, i32) {
    %c0_i32 = arith.constant 0 : i32
    %c0_i32_0 = arith.constant 0 : i32
    return %arg0, %c0_i32 : i32, i32
  }
  func.func @transform_2(%arg0: i32) -> (i32, i32) {
    %c0_i32 = arith.constant 0 : i32
    %c0_i32_0 = arith.constant 0 : i32
    %c0_i32_1 = arith.constant 0 : i32
    return %c0_i32, %c0_i32_0 : i32, i32
  }
  func.func @transform_3(%arg0: i32) -> (i32, i32) {
    %c0_i32 = arith.constant 0 : i32
    %c0_i32_0 = arith.constant 0 : i32
    %c0_i32_1 = arith.constant 0 : i32
    return %c0_i32, %c0_i32_0 : i32, i32
  }
  func.func @transform_4(%arg0: i32) -> (i32, i32) {
    %c0_i32 = arith.constant 0 : i32
    %c0_i32_0 = arith.constant 0 : i32
    %c0_i32_1 = arith.constant 0 : i32
    return %c0_i32, %c0_i32_0 : i32, i32
  }
  func.func @transform_5(%arg0: i32) -> (i32, i32) {
    %c0_i32 = arith.constant 0 : i32
    %c0_i32_0 = arith.constant 0 : i32
    %c0_i32_1 = arith.constant 0 : i32
    return %c0_i32, %c0_i32_0 : i32, i32
  }
  func.func @transform_6(%arg0: i32) -> (i32, i32) {
    %c0_i32 = arith.constant 0 : i32
    %c0_i32_0 = arith.constant 0 : i32
    %c0_i32_1 = arith.constant 0 : i32
    return %c0_i32, %c0_i32_0 : i32, i32
  }
  func.func @transform_7(%arg0: i32) -> (i32, i32) {
    %c0_i32 = arith.constant 0 : i32
    %c0_i32_0 = arith.constant 0 : i32
    return %arg0, %c0_i32 : i32, i32
  }
}

</mosaic_0001>

<bundles_post_ra>
// kernel: gate1_forward.1
= control target key start
LH: loop header
LB: loop body
LE: loop exit
PB: predicated region body
PF: predicated region fallthrough
CT: control target
= control target key end

     0   :  { %12 = vsyncpa [#allocation3], 0  ;;  %s401_s0 = inlined_call_operand.vmem [shape: f32[8,128], index: 0, kind: input, shape index: {}]   ;;  %s402_s1 = inlined_call_operand.vmem [shape: f32[8,128], index: 1, kind: input, shape index: {}]   ;;  %s403_s2 = inlined_call_operand.hbm [shape: f32[128,128], index: 2, kind: input, shape index: {}]   ;;  %s404_s3 = inlined_call_operand.vmem [shape: f32[1,128], index: 3, kind: input, shape index: {}]   ;;  %s405_s4 = inlined_call_operand.hbm [shape: f32[128,128], index: 4, kind: input, shape index: {}]   ;;  %s406_s5 = inlined_call_operand.hbm [shape: f32[128,128], index: 5, kind: input, shape index: {}]   ;;  %s407_s6 = inlined_call_operand.vmem [shape: f32[1,128], index: 6, kind: input, shape index: {}]   ;;  %s408_s7 = inlined_call_operand.hbm [shape: f32[8,128], index: 7, kind: output, shape index: {}]  }
   0x1   :  { %13 = vsyncpa [#allocation6], 0 }
   0x2   :  { %14 = vsyncpa [#allocation4], 0  ;;  %s38_s26 = sshll.u32 %s405_s4, 4  ;;  %s331_s27 = smov [#allocation5]   ;;  %s39_s26 = int_to_ptr.hbm [resolvable:$true] %s38_s26 }
   0x3   :  { %s40_s28 = sshll.u32 %s331_s27, 4  ;;  %s23_s8 = sshll.u32 %s403_s2, 4  ;;  %s41_s28 = int_to_ptr.vmem [resolvable:$true] %s40_s28  ;;  %s24_s8 = int_to_ptr.hbm [resolvable:$true] %s23_s8 }
   0x4   :  { %s332_s9 = smov 128   ;;  %s333_s10 = smov 8  }
   0x5   :  { %46 = dma.hbm_to_vmem [thread:$0]  %s39_s26, 2048, %s41_s28, [#allocation6], %s332_s9, %s332_s9, %s333_s10  }
   0x6   :  { %s334_s11 = smov [#allocation2]   ;;  %s51_s15 = sshll.u32 %s406_s5, 4  ;;  %s52_s15 = int_to_ptr.hbm [resolvable:$true] %s51_s15 }
   0x7   :  { %s25_s12 = sshll.u32 %s334_s11, 4  ;;  %s335_s4 = smov [#allocation7]   ;;  %s26_s12 = int_to_ptr.vmem [resolvable:$true] %s25_s12 }
   0x8   :  { %31 = dma.hbm_to_vmem [thread:$0]  %s24_s8, 2048, %s26_s12, [#allocation3], %s332_s9, %s332_s9, %s333_s10  }
   0x9   :  { %s53_s16 = sshll.u32 %s335_s4, 4  ;;  %s54_s16 = int_to_ptr.vmem [resolvable:$true] %s53_s16 }
   0xa   :  { %59 = dma.hbm_to_vmem [thread:$0]  %s52_s15, 2048, %s54_s16, [#allocation6], %s332_s9, %s332_s9, %s333_s10  }
   0xb   :  { %325 = dma.done.wait [#allocation3], 2048  }
   0xc   :  { %326 = vsyncadd [#allocation3], 4294965248 }
   0xd   :  { %327 = dma.done.wait [#allocation6], 4096  }
   0xe   :  { %328 = vsyncadd [#allocation6], 4294963200  ;;  %v91_v0 = vld [vmem:[#allocation2 + $0x78] sm:$0xff]  ;;  %v90_v1 = vld [vmem:[#allocation2 + $0x70] sm:$0xff]  ;;  %s208_s24 = sshll.u32 %s408_s7, 4  ;;  %s209_s24 = int_to_ptr.hbm [resolvable:$true] %s208_s24 }
   0xf   :  { %96 = vmatpush.msra.mxu0 %v91_v0  ;;  %v89_v2 = vld [vmem:[#allocation2 + $0x68] sm:$0xff]  ;;  %v88_v3 = vld [vmem:[#allocation2 + $0x60] sm:$0xff]  ;;  %v131_v4 = vld [vmem:[#allocation5 + $0x78] sm:$0xff] }
  0x10   :  { %v87_v5 = vld [vmem:[#allocation2 + $0x58] sm:$0xff]  ;;  %168 = vmatpush.msra.mxu2 %v131_v4  ;;  %v130_v6 = vld [vmem:[#allocation5 + $0x70] sm:$0xff]  ;;  %v129_v8 = vld [vmem:[#allocation5 + $0x68] sm:$0xff] }
  0x11   :  { %97 = vmatpush.msra.mxu0 %v90_v1  ;;  %v147_v7 = vld [vmem:[#allocation7 + $0x78] sm:$0xff]  ;;  %v146_v9 = vld [vmem:[#allocation7 + $0x70] sm:$0xff]  ;;  %v145_v11 = vld [vmem:[#allocation7 + $0x68] sm:$0xff] }
  0x12   :  { %148 = vmatpush.msra.mxu1 %v147_v7  ;;  %v86_v10 = vld [vmem:[#allocation2 + $0x50] sm:$0xff]  ;;  %169 = vmatpush.msra.mxu2 %v130_v6  ;;  %v128_v12 = vld [vmem:[#allocation5 + $0x60] sm:$0xff]  ;;  %v85_v13 = vld [vmem:[#allocation2 + $0x48] sm:$0xff] }
  0x13   :  { %98 = vmatpush.msra.mxu0 %v89_v2  ;;  %v144_v14 = vld [vmem:[#allocation7 + $0x60] sm:$0xff]  ;;  %v127_v15 = vld [vmem:[#allocation5 + $0x58] sm:$0xff]  ;;  %v126_v18 = vld [vmem:[#allocation5 + $0x50] sm:$0xff] }
  0x14   :  { %149 = vmatpush.msra.mxu1 %v146_v9  ;;  %170 = vmatpush.msra.mxu2 %v129_v8  ;;  %v84_v16 = vld [vmem:[#allocation2 + $0x40] sm:$0xff]  ;;  %v143_v17 = vld [vmem:[#allocation7 + $0x58] sm:$0xff]  ;;  %v142_v20 = vld [vmem:[#allocation7 + $0x50] sm:$0xff] }
  0x15   :  { %99 = vmatpush.msra.mxu0 %v88_v3  ;;  %v83_v19 = vld [vmem:[#allocation2 + $0x38] sm:$0xff]  ;;  %v82_v21 = vld [vmem:[#allocation2 + $0x30] sm:$0xff]  ;;  %v125_v22 = vld [vmem:[#allocation5 + $0x48] sm:$0xff] }
  0x16   :  { %150 = vmatpush.msra.mxu1 %v145_v11  ;;  %171 = vmatpush.msra.mxu2 %v128_v12  ;;  %v141_v23 = vld [vmem:[#allocation7 + $0x48] sm:$0xff]  ;;  %v124_v24 = vld [vmem:[#allocation5 + $0x40] sm:$0xff]  ;;  %v123_v27 = vld [vmem:[#allocation5 + $0x38] sm:$0xff] }
  0x17   :  { %100 = vmatpush.msra.mxu0 %v87_v5  ;;  %v81_v25 = vld [vmem:[#allocation2 + $0x28] sm:$0xff]  ;;  %v140_v26 = vld [vmem:[#allocation7 + $0x40] sm:$0xff]  ;;  %v139_v29 = vld [vmem:[#allocation7 + $0x38] sm:$0xff] }
  0x18   :  { %151 = vmatpush.msra.mxu1 %v144_v14  ;;  %172 = vmatpush.msra.mxu2 %v127_v15  ;;  %v80_v28 = vld [vmem:[#allocation2 + $0x20] sm:$0xff]  ;;  %v122_v30 = vld [vmem:[#allocation5 + $0x30] sm:$0xff]  ;;  %v79_v31 = vld [vmem:[#allocation2 + $0x18] sm:$0xff] }
  0x19   :  { %101 = vmatpush.msra.mxu0 %v86_v10  ;;  %v138_v32 = vld [vmem:[#allocation7 + $0x30] sm:$0xff]  ;;  %v121_v33 = vld [vmem:[#allocation5 + $0x28] sm:$0xff]  ;;  %v120_v36 = vld [vmem:[#allocation5 + $0x20] sm:$0xff] }
  0x1a   :  { %152 = vmatpush.msra.mxu1 %v143_v17  ;;  %173 = vmatpush.msra.mxu2 %v126_v18  ;;  %v78_v34 = vld [vmem:[#allocation2 + $0x10] sm:$0xff]  ;;  %v137_v35 = vld [vmem:[#allocation7 + $0x28] sm:$0xff]  ;;  %v136_v38 = vld [vmem:[#allocation7 + $0x20] sm:$0xff] }
  0x1b   :  { %102 = vmatpush.msra.mxu0 %v85_v13  ;;  %v77_v37 = vld [vmem:[#allocation2 + $0x8] sm:$0xff]  ;;  %v119_v39 = vld [vmem:[#allocation5 + $0x18] sm:$0xff]  ;;  %v76_v40 = vld [vmem:[#allocation2] sm:$0xff] }
  0x1c   :  { %153 = vmatpush.msra.mxu1 %v142_v20  ;;  %174 = vmatpush.msra.mxu2 %v125_v22  ;;  %v135_v41 = vld [vmem:[#allocation7 + $0x18] sm:$0xff]  ;;  %v75_v42 = vld [vmem:[%s402_s1] sm:$0xff]  ;;  %v118_v43 = vld [vmem:[#allocation5 + $0x10] sm:$0xff] }
  0x1d   :  { %103 = vmatpush.msra.mxu0 %v84_v16  ;;  %v134_v44 = vld [vmem:[#allocation7 + $0x10] sm:$0xff]  ;;  %v117_v45 = vld [vmem:[#allocation5 + $0x8] sm:$0xff]  ;;  %v116_v46 = vld [vmem:[#allocation5] sm:$0xff] }
  0x1e   :  { %154 = vmatpush.msra.mxu1 %v141_v23  ;;  %175 = vmatpush.msra.mxu2 %v124_v24  ;;  %v74_v47 = vld [vmem:[%s401_s0] sm:$0xff]  ;;  %v133_v48 = vld [vmem:[#allocation7 + $0x8] sm:$0xff]  ;;  %s336_s0 = smov [#allocation8]  }
  0x1f   :  { %104 = vmatpush.msra.mxu0 %v83_v19  ;;  %v132_v49 = vld [vmem:[#allocation7] sm:$0xff]  ;;  %s206_s22 = sshll.u32 %s336_s0, 4  ;;  %s207_s22 = int_to_ptr.vmem [resolvable:$true] %s206_s22 }
  0x20   :  { %155 = vmatpush.msra.mxu1 %v140_v26  ;;  %176 = vmatpush.msra.mxu2 %v123_v27  ;;  %v225_v50 = vld [vmem:[%s404_s3] ss:$0 sm:$0xff] }
  0x21   :  { %105 = vmatpush.msra.mxu0 %v82_v21  ;;  %v226_v54 = vld [vmem:[%s407_s6] ss:$0 sm:$0xff] }
  0x22   :  { %156 = vmatpush.msra.mxu1 %v139_v29  ;;  %177 = vmatpush.msra.mxu2 %v122_v30 }
  0x23   :  { %106 = vmatpush.msra.mxu0 %v81_v25 }
  0x24   :  { %157 = vmatpush.msra.mxu1 %v138_v32  ;;  %178 = vmatpush.msra.mxu2 %v121_v33 }
  0x25   :  { %107 = vmatpush.msra.mxu0 %v80_v28 }
  0x26   :  { %158 = vmatpush.msra.mxu1 %v137_v35  ;;  %179 = vmatpush.msra.mxu2 %v120_v36 }
  0x27   :  { %108 = vmatpush.msra.mxu0 %v79_v31 }
  0x28   :  { %159 = vmatpush.msra.mxu1 %v136_v38  ;;  %180 = vmatpush.msra.mxu2 %v119_v39 }
  0x29   :  { %109 = vmatpush.msra.mxu0 %v78_v34 }
  0x2a   :  { %160 = vmatpush.msra.mxu1 %v135_v41  ;;  %181 = vmatpush.msra.mxu2 %v118_v43 }
  0x2b   :  { %110 = vmatpush.msra.mxu0 %v77_v37 }
  0x2c   :  { %161 = vmatpush.msra.mxu1 %v134_v44  ;;  %182 = vmatpush.msra.mxu2 %v117_v45 }
  0x2d   :  { %111 = vmatpush.msra.mxu0 %v76_v40 }
  0x2e   :  { %112 = vmatmul.f32.vlgmr.msra.gmra.mxu0 %v75_v42  ;;  %183 = vmatpush.msra.mxu2 %v116_v46 }
  0x2f   :  { %184 = vmatmul.f32.vlgmr.msra.gmra.mxu2 %v74_v47  ;;  %162 = vmatpush.msra.mxu1 %v133_v48 }
  0x31   :  { %163 = vmatpush.msra.mxu1 %v132_v49 }
  0xab   :  { %v113_v51 = vpop.f32.mrf.mxu0 }
  0xac   :  { %v114_v52 = vadd.f32 %v225_v50, %v113_v51 }
  0xae   :  { %164 = vmatmul.f32.vlgmr.msra.gmra.mxu1 %v114_v52  ;;  %v197_v61 = vsub.f32 %v114_v52, %v74_v47 }
  0xb2   :  { %v185_v53 = vpop.f32.mrf.mxu2 }
 0x12b   :  { %v165_v55 = vpop.f32.mrf.mxu1 }
 0x12c   :  { %v186_v56 = vadd.f32 %v185_v53, %v165_v55 }
 0x12e   :  { %v192_v57 = vadd.f32 %v226_v54, %v186_v56 }
 0x130   :  { %v193_v58 = vmul.f32 0.5, %v192_v57 }
 0x132   :  { %227 = vtanh.f32 %v193_v58 }
 0x138   :  { %v228_v59 = vpop.eup %227 }
 0x139   :  { %v195_v60 = vadd.f32 1.0, %v228_v59 }
 0x13b   :  { %v196_v62 = vmul.f32 0.5, %v195_v60 }
 0x13d   :  { %v198_v63 = vmul.f32 %v197_v61, %v196_v62 }
 0x13f   :  { %v199_v0 = vadd.f32 %v198_v63, %v74_v47 }
 0x141   :  { %200 = vst [vmem:[#allocation8] sm:$0xff] %v199_v0 }
 0x142   :  { %211 = dma.vmem_to_hbm [thread:$0]  %s207_s22, 128, %s209_s24, [#allocation4]  }
 0x143   :  { %329 = dma.done.wait [#allocation4], 128  }
 0x144   :  { %330 = vsyncadd [#allocation4], 4294967168 }
 0x145   :  { %216 = vsyncpa [#allocation3], 1 }
 0x146   :  { %217 = vsyncpa [#allocation6], 1 }
 0x147   :  { %218 = vsyncpa [#allocation4], 1 }

</bundles_post_ra>
